<compile_context>
chip_gen: v7x
topology: tpu7x:2x2x1
jax: 0.10.0
libtpu: 0.0.40
codegen_flags: <defaults>
</compile_context>

<pallas_src>
import functools

import jax
import jax.numpy as jnp
from jax.experimental import pallas as pl
from jax.experimental.pallas import tpu as pltpu


def _round_up(v, m):
    return (v + m - 1) // m * m


# ----------------------------- Pallas kernel -------------------------------
def _vacim_forward_kernel(
    relu_in_bf16,
    xt_ref,
    pw1_ref, pb1_ref, pw2_ref, pb2_ref,
    dw1_ref, wcomb_ref, bcomb_ref, dw2_ref, db2_ref, dw3_ref, db3_ref,
    y_ref,
):
    f32 = jnp.float32
    bf16 = jnp.bfloat16

    def act(v_f32):
        # Bias already added in f32.  On v6e/v7x do the ReLU on packed bf16
        # vregs (half the VPU ops); on v5e keep the max in f32 (no bf16 VALU).
        if relu_in_bf16:
            return jnp.maximum(v_f32.astype(bf16), 0)
        return jnp.maximum(v_f32, 0.0).astype(bf16)

    xt = xt_ref[...]                                     # (T, d_x + k) bf16

    # prior_z trunk.  p_w1xt is zero-padded over the one-hot rows, so the fused
    # [x | t] stream feeds it directly (t rows contribute exactly 0).
    h = act(jnp.dot(xt, pw1_ref[...], preferred_element_type=f32) + pb1_ref[...])
    h = act(jnp.dot(h, pw2_ref[...], preferred_element_type=f32) + pb2_ref[...])

    # dec_y layer 1 on concat([x, t, z_mu], 1), with prior_z's output layer
    # folded into w_comb / b_comb (so z_mu never exists as a tensor):
    #   [x,t,z_mu] @ d_w1 + d_b1 == xt @ d_w1[:dx+k] + relu_h @ w_comb + b_comb
    g = act(
        jnp.dot(xt, dw1_ref[...], preferred_element_type=f32)
        + jnp.dot(h, wcomb_ref[...], preferred_element_type=f32)
        + bcomb_ref[...]
    )
    g = act(jnp.dot(g, dw2_ref[...], preferred_element_type=f32) + db2_ref[...])
    y_ref[...] = (jnp.dot(g, dw3_ref[...], preferred_element_type=f32)
                  + db3_ref[...]).astype(y_ref.dtype)


# ------------------------------ host wrapper --------------------------------
def _choose_tile(n, batch_tile):
    """Sublane-aligned (16) batch tile.

    Large tiles amortize the per-grid-step overhead (the dominant cost at small
    tiles).  When more than one step is needed, best-effort adjust towards an
    even step count so the "parallel" grid axis splits over both v7x TCs.
    """
    tile = max(16, min(_round_up(batch_tile, 16), _round_up(n, 16)))
    steps = -(-n // tile)
    if steps > 1 and steps % 2 == 1:
        steps += 1
        tile = max(16, _round_up(-(-n // steps), 16))
    return tile


def vacim_predict_outcome(x, t_onehot, kparams, *, batch_tile=2048,
                          relu_in_bf16=True):
    """x: (N, d_x) f32, t_onehot: (N, k) f32 -> y_mu: (N, d_y) f32.

    `kparams` comes from `prepare_kernel_params` (fused / folded bf16 weights).
    Set `relu_in_bf16=False` on v5e (its VPU has no bf16 path).
    """
    n, d_x = x.shape
    k = t_onehot.shape[1]
    d_y = kparams["d_b3"].shape[1]
    hidden = kparams["p_w2"].shape[0]

    # Fused [x | t_onehot] activation stream; cast -> concat -> pad fuse into a
    # single XLA pass over x/t (no extra HBM round-trip of the padded copy).
    bf16 = jnp.bfloat16
    xt = jnp.concatenate([x.astype(bf16), t_onehot.astype(bf16)], axis=1)

    tile = _choose_tile(n, batch_tile)
    n_pad = _round_up(n, tile)
    if n_pad != n:
        xt = jnp.pad(xt, ((0, n_pad - n), (0, 0)))
    grid = (n_pad // tile,)

    weights = (
        kparams["p_w1xt"], kparams["p_b1"], kparams["p_w2"], kparams["p_b2"],
        kparams["d_w1xt"], kparams["w_comb"], kparams["b_comb"],
        kparams["d_w2"], kparams["d_b2"], kparams["d_w3"], kparams["d_b3"],
    )
    weight_bytes = sum(int(w.size) * w.dtype.itemsize for w in weights)

    # Per-step VMEM estimate: double-buffered I/O tiles, resident weights, and
    # a generous allowance for the (tile, hidden) f32/bf16 intermediates.  Only
    # raise the scoped-VMEM limit (16 MiB default on v5e, 32 MiB on v6e/v7x)
    # when needed; stay well under v7x's 64 MiB physical VMEM.
    est = (2 * tile * (d_x + k) * 2          # xt tile (bf16, double-buffered)
           + 2 * tile * d_y * 2              # y tile  (bf16, double-buffered)
           + 2 * weight_bytes                # weights (worst case 2 buffers)
           + 6 * tile * hidden * 4)          # live intermediates
    vmem_limit = None
    if est > (12 << 20):
        vmem_limit = min(max(32 << 20, 2 * est), 56 << 20)

    # Constant-index specs keep the weight tiles VMEM-resident across steps.
    def rep(a):
        return pl.BlockSpec(a.shape, lambda i: (0, 0))

    in_specs = [pl.BlockSpec((tile, d_x + k), lambda i: (i, 0))]
    in_specs += [rep(w) for w in weights]
    out_specs = pl.BlockSpec((tile, d_y), lambda i: (i, 0))

    flops_per_row = 2 * ((d_x + k) * hidden      # prior layer 1 (fused width)
                         + hidden * hidden       # prior layer 2
                         + (d_x + k) * hidden    # dec layer 1, [x|t] block
                         + hidden * hidden       # dec layer 1, folded z block
                         + hidden * hidden       # dec layer 2
                         + hidden * d_y)         # dec layer 3
    cost = pl.CostEstimate(
        flops=n_pad * flops_per_row,
        transcendentals=0,
        bytes_accessed=int(xt.size) * 2 + n_pad * d_y * 2 + weight_bytes,
    )

    fn = pl.pallas_call(
        functools.partial(_vacim_forward_kernel, relu_in_bf16),
        out_shape=jax.ShapeDtypeStruct((n_pad, d_y), jnp.bfloat16),
        grid=grid,
        in_specs=in_specs,
        out_specs=out_specs,
        compiler_params=pltpu.CompilerParams(
            dimension_semantics=("parallel",),
            vmem_limit_bytes=vmem_limit,
        ),
        cost_estimate=cost,
    )
    y = fn(xt, *weights)
    # Drop padded rows (they hold bias-driven garbage) and restore f32.
    return y[:n].astype(jnp.float32)


# --------------------------- parameter construction -------------------------
def _linear_init(key, fan_in, fan_out):
    """Deterministic PyTorch-style uniform(-1/sqrt(fan_in), 1/sqrt(fan_in))."""
    kw, kb = jax.random.split(key)
    bound = 1.0 / jnp.sqrt(float(fan_in))
    w = jax.random.uniform(kw, (fan_in, fan_out), jnp.float32, -bound, bound)
    b = jax.random.uniform(kb, (1, fan_out), jnp.float32, -bound, bound)
    return w, b


def make_vacim_params(key, d_x, d_y, k, d_z=20, hidden=128):
    """Reference (f32, un-fused) parameters of the two MLPs used by forward()."""
    keys = jax.random.split(key, 6)
    # prior_z : MLP([d_x, hidden, hidden, 2*d_z]); chunk(2,1)[0] == first d_z cols
    p_w1, p_b1 = _linear_init(keys[0], d_x, hidden)
    p_w2, p_b2 = _linear_init(keys[1], hidden, hidden)
    p_w3_full, p_b3_full = _linear_init(keys[2], hidden, 2 * d_z)
    p_w3, p_b3 = p_w3_full[:, :d_z], p_b3_full[:, :d_z]

    # dec_y : MLP([d_x + k + d_z, hidden, hidden, 2*d_y]); keep y_mu half
    d_in = d_x + k + d_z
    d_w1, d_b1 = _linear_init(keys[3], d_in, hidden)
    d_w2, d_b2 = _linear_init(keys[4], hidden, hidden)
    d_w3_full, d_b3_full = _linear_init(keys[5], hidden, 2 * d_y)
    d_w3, d_b3 = d_w3_full[:, :d_y], d_b3_full[:, :d_y]

    return {
        "p_w1": p_w1, "p_b1": p_b1, "p_w2": p_w2, "p_b2": p_b2,
        "p_w3": p_w3, "p_b3": p_b3,
        "d_w1": d_w1, "d_b1": d_b1, "d_w2": d_w2, "d_b2": d_b2,
        "d_w3": d_w3, "d_b3": d_b3,
    }


def prepare_kernel_params(params, d_x, k):
    """Fuse / fold / cast the f32 params into the layout the kernel consumes."""
    bf16 = jnp.bfloat16
    f32 = jnp.float32
    hidden = params["p_w1"].shape[1]

    # prior_z layer 1, zero-padded over the one-hot rows of the fused [x|t]
    # input.  The pad is exactly 0.0 in bf16, so the t columns contribute 0.
    p_w1xt = jnp.concatenate(
        [params["p_w1"], jnp.zeros((k, hidden), f32)], axis=0)

    # Fold prior_z's output layer into dec_y's first layer (exact algebra):
    #   z_mu @ d_w1[z-rows] = relu_h @ (p_w3 @ d_w1[z-rows]) + p_b3 @ d_w1[z-rows]
    d_w1_xt = params["d_w1"][: d_x + k]
    d_w1_z = params["d_w1"][d_x + k:]
    w_comb = params["p_w3"] @ d_w1_z                     # (hidden, hidden) f32
    b_comb = params["p_b3"] @ d_w1_z + params["d_b1"]    # (1, hidden)      f32

    return {
        "p_w1xt": p_w1xt.astype(bf16), "p_b1": params["p_b1"],
        "p_w2": params["p_w2"].astype(bf16), "p_b2": params["p_b2"],
        "d_w1xt": d_w1_xt.astype(bf16),
        "w_comb": w_comb.astype(bf16), "b_comb": b_comb,
        "d_w2": params["d_w2"].astype(bf16), "d_b2": params["d_b2"],
        "d_w3": params["d_w3"].astype(bf16), "d_b3": params["d_b3"],
    }


def _reference(x, t_onehot, p):
    """Pure-JAX f32 reference of VACIM.predict_outcome for verification."""
    h = jnp.maximum(x @ p["p_w1"] + p["p_b1"], 0.0)
    h = jnp.maximum(h @ p["p_w2"] + p["p_b2"], 0.0)
    z_mu = h @ p["p_w3"] + p["p_b3"]
    inp = jnp.concatenate([x, t_onehot, z_mu], axis=1)
    g = jnp.maximum(inp @ p["d_w1"] + p["d_b1"], 0.0)
    g = jnp.maximum(g @ p["d_w2"] + p["d_b2"], 0.0)
    return g @ p["d_w3"] + p["d_b3"]


if __name__ == "__main__":
    # Small, forward-consistent shapes.
    d_x, d_y, k, d_z, hidden = 16, 4, 3, 20, 32

    key = jax.random.PRNGKey(0)
    kx, kp = jax.random.split(key)
    params = make_vacim_params(kp, d_x, d_y, k, d_z=d_z, hidden=hidden)
    kparams = prepare_kernel_params(params, d_x, k)

    # (n, batch_tile, relu_in_bf16) configs: padding path (single step),
    # multi-step tiled/pipelined path, and the v5e-style f32-ReLU path.
    # Tiny tiles keep the test fast; the production default is batch_tile=2048.
    for n, tile, bf16_relu in ((10, 2048, True), (48, 16, True), (48, 16, False)):
        kxi, kti = jax.random.split(jax.random.fold_in(kx, 2 * n + int(bf16_relu)))
        x = jax.random.normal(kxi, (n, d_x), jnp.float32)
        t = jax.random.randint(kti, (n,), 0, k)          # integer treatments
        t_onehot = jax.nn.one_hot(t, k, dtype=jnp.float32)

        y_mu = vacim_predict_outcome(x, t_onehot, kparams, batch_tile=tile,
                                     relu_in_bf16=bf16_relu)
        y_mu = jax.block_until_ready(y_mu)

        y_ref = _reference(x, t_onehot, params)
        assert y_mu.shape == (n, d_y)
        assert y_mu.dtype == jnp.float32
        # bf16 weights / matmul inputs / output vs full-f32 reference -> loose tol.
        assert jnp.allclose(y_mu, y_ref, atol=5e-2, rtol=5e-2), "mismatch vs reference"

    print("KERNEL_OK")
</pallas_src>

<mosaic_0001>
module attributes {stable_mosaic.version = 11 : i64} {
  func.func @_vacim_forward_kernel(%arg0: i32, %arg1: memref<16x19xbf16, #tpu.memory_space<vmem>>, %arg2: memref<19x32xbf16, #tpu.memory_space<vmem>>, %arg3: memref<1x32xf32, #tpu.memory_space<vmem>>, %arg4: memref<32x32xbf16, #tpu.memory_space<vmem>>, %arg5: memref<1x32xf32, #tpu.memory_space<vmem>>, %arg6: memref<19x32xbf16, #tpu.memory_space<vmem>>, %arg7: memref<32x32xbf16, #tpu.memory_space<vmem>>, %arg8: memref<1x32xf32, #tpu.memory_space<vmem>>, %arg9: memref<32x32xbf16, #tpu.memory_space<vmem>>, %arg10: memref<1x32xf32, #tpu.memory_space<vmem>>, %arg11: memref<32x4xbf16, #tpu.memory_space<vmem>>, %arg12: memref<1x4xf32, #tpu.memory_space<vmem>>, %arg13: memref<16x4xbf16, #tpu.memory_space<vmem>>) attributes {dimension_semantics = [#tpu.dimension_semantics<parallel>], iteration_bounds = array<i64: 1>, scalar_prefetch = 0 : i64, scratch_operands = 0 : i64, tpu.core_type = #tpu.core_type<tc>, window_params = [{transform_indices = @transform_0, window_bounds = array<i64: 16, 19>}, {pipeline_mode = #tpu.pipeline_mode<synchronous>, transform_indices = @transform_1, window_bounds = array<i64: 19, 32>}, {pipeline_mode = #tpu.pipeline_mode<synchronous>, transform_indices = @transform_2, window_bounds = array<i64: 1, 32>}, {pipeline_mode = #tpu.pipeline_mode<synchronous>, transform_indices = @transform_3, window_bounds = array<i64: 32, 32>}, {pipeline_mode = #tpu.pipeline_mode<synchronous>, transform_indices = @transform_4, window_bounds = array<i64: 1, 32>}, {pipeline_mode = #tpu.pipeline_mode<synchronous>, transform_indices = @transform_5, window_bounds = array<i64: 19, 32>}, {pipeline_mode = #tpu.pipeline_mode<synchronous>, transform_indices = @transform_6, window_bounds = array<i64: 32, 32>}, {pipeline_mode = #tpu.pipeline_mode<synchronous>, transform_indices = @transform_7, window_bounds = array<i64: 1, 32>}, {pipeline_mode = #tpu.pipeline_mode<synchronous>, transform_indices = @transform_8, window_bounds = array<i64: 32, 32>}, {pipeline_mode = #tpu.pipeline_mode<synchronous>, transform_indices = @transform_9, window_bounds = array<i64: 1, 32>}, {pipeline_mode = #tpu.pipeline_mode<synchronous>, transform_indices = @transform_10, window_bounds = array<i64: 32, 4>}, {pipeline_mode = #tpu.pipeline_mode<synchronous>, transform_indices = @transform_11, window_bounds = array<i64: 1, 4>}, {transform_indices = @transform_12, window_bounds = array<i64: 16, 4>}]} {
    %c0 = arith.constant 0 : index
    %c0_0 = arith.constant 0 : index
    %0 = vector.load %arg1[%c0, %c0_0] : memref<16x19xbf16, #tpu.memory_space<vmem>>, vector<16x19xbf16>
    %c0_1 = arith.constant 0 : index
    %c0_2 = arith.constant 0 : index
    %1 = vector.load %arg2[%c0_1, %c0_2] : memref<19x32xbf16, #tpu.memory_space<vmem>>, vector<19x32xbf16>
    %cst = arith.constant dense<0.000000e+00> : vector<16x32xf32>
    %2 = tpu.matmul %0, %1, %cst {dimension_numbers = #tpu.dot_dimension_numbers<[1], [0], [0], [1], [0, 0, 1, 1], [], []>} : vector<16x19xbf16>, vector<19x32xbf16>, vector<16x32xf32> -> vector<16x32xf32>
    %c0_3 = arith.constant 0 : index
    %c0_4 = arith.constant 0 : index
    %3 = vector.load %arg3[%c0_3, %c0_4] : memref<1x32xf32, #tpu.memory_space<vmem>>, vector<1x32xf32>
    %4 = vector.broadcast %3 : vector<1x32xf32> to vector<16x32xf32>
    %5 = arith.addf %2, %4 : vector<16x32xf32>
    %6 = arith.truncf %5 : vector<16x32xf32> to vector<16x32xbf16>
    %cst_5 = arith.constant 0.000000e+00 : bf16
    %7 = vector.broadcast %cst_5 : bf16 to vector<16x32xbf16>
    %8 = arith.maximumf %6, %7 : vector<16x32xbf16>
    %c0_6 = arith.constant 0 : index
    %c0_7 = arith.constant 0 : index
    %9 = vector.load %arg4[%c0_6, %c0_7] : memref<32x32xbf16, #tpu.memory_space<vmem>>, vector<32x32xbf16>
    %cst_8 = arith.constant dense<0.000000e+00> : vector<16x32xf32>
    %10 = tpu.matmul %8, %9, %cst_8 {dimension_numbers = #tpu.dot_dimension_numbers<[1], [0], [0], [1], [0, 0, 1, 1], [], []>} : vector<16x32xbf16>, vector<32x32xbf16>, vector<16x32xf32> -> vector<16x32xf32>
    %c0_9 = arith.constant 0 : index
    %c0_10 = arith.constant 0 : index
    %11 = vector.load %arg5[%c0_9, %c0_10] : memref<1x32xf32, #tpu.memory_space<vmem>>, vector<1x32xf32>
    %12 = vector.broadcast %11 : vector<1x32xf32> to vector<16x32xf32>
    %13 = arith.addf %10, %12 : vector<16x32xf32>
    %14 = arith.truncf %13 : vector<16x32xf32> to vector<16x32xbf16>
    %cst_11 = arith.constant 0.000000e+00 : bf16
    %15 = vector.broadcast %cst_11 : bf16 to vector<16x32xbf16>
    %16 = arith.maximumf %14, %15 : vector<16x32xbf16>
    %c0_12 = arith.constant 0 : index
    %c0_13 = arith.constant 0 : index
    %17 = vector.load %arg6[%c0_12, %c0_13] : memref<19x32xbf16, #tpu.memory_space<vmem>>, vector<19x32xbf16>
    %cst_14 = arith.constant dense<0.000000e+00> : vector<16x32xf32>
    %18 = tpu.matmul %0, %17, %cst_14 {dimension_numbers = #tpu.dot_dimension_numbers<[1], [0], [0], [1], [0, 0, 1, 1], [], []>} : vector<16x19xbf16>, vector<19x32xbf16>, vector<16x32xf32> -> vector<16x32xf32>
    %c0_15 = arith.constant 0 : index
    %c0_16 = arith.constant 0 : index
    %19 = vector.load %arg7[%c0_15, %c0_16] : memref<32x32xbf16, #tpu.memory_space<vmem>>, vector<32x32xbf16>
    %cst_17 = arith.constant dense<0.000000e+00> : vector<16x32xf32>
    %20 = tpu.matmul %16, %19, %cst_17 {dimension_numbers = #tpu.dot_dimension_numbers<[1], [0], [0], [1], [0, 0, 1, 1], [], []>} : vector<16x32xbf16>, vector<32x32xbf16>, vector<16x32xf32> -> vector<16x32xf32>
    %21 = arith.addf %18, %20 : vector<16x32xf32>
    %c0_18 = arith.constant 0 : index
    %c0_19 = arith.constant 0 : index
    %22 = vector.load %arg8[%c0_18, %c0_19] : memref<1x32xf32, #tpu.memory_space<vmem>>, vector<1x32xf32>
    %23 = vector.broadcast %22 : vector<1x32xf32> to vector<16x32xf32>
    %24 = arith.addf %21, %23 : vector<16x32xf32>
    %25 = arith.truncf %24 : vector<16x32xf32> to vector<16x32xbf16>
    %cst_20 = arith.constant 0.000000e+00 : bf16
    %26 = vector.broadcast %cst_20 : bf16 to vector<16x32xbf16>
    %27 = arith.maximumf %25, %26 : vector<16x32xbf16>
    %c0_21 = arith.constant 0 : index
    %c0_22 = arith.constant 0 : index
    %28 = vector.load %arg9[%c0_21, %c0_22] : memref<32x32xbf16, #tpu.memory_space<vmem>>, vector<32x32xbf16>
    %cst_23 = arith.constant dense<0.000000e+00> : vector<16x32xf32>
    %29 = tpu.matmul %27, %28, %cst_23 {dimension_numbers = #tpu.dot_dimension_numbers<[1], [0], [0], [1], [0, 0, 1, 1], [], []>} : vector<16x32xbf16>, vector<32x32xbf16>, vector<16x32xf32> -> vector<16x32xf32>
    %c0_24 = arith.constant 0 : index
    %c0_25 = arith.constant 0 : index
    %30 = vector.load %arg10[%c0_24, %c0_25] : memref<1x32xf32, #tpu.memory_space<vmem>>, vector<1x32xf32>
    %31 = vector.broadcast %30 : vector<1x32xf32> to vector<16x32xf32>
    %32 = arith.addf %29, %31 : vector<16x32xf32>
    %33 = arith.truncf %32 : vector<16x32xf32> to vector<16x32xbf16>
    %cst_26 = arith.constant 0.000000e+00 : bf16
    %34 = vector.broadcast %cst_26 : bf16 to vector<16x32xbf16>
    %35 = arith.maximumf %33, %34 : vector<16x32xbf16>
    %c0_27 = arith.constant 0 : index
    %c0_28 = arith.constant 0 : index
    %36 = vector.load %arg11[%c0_27, %c0_28] : memref<32x4xbf16, #tpu.memory_space<vmem>>, vector<32x4xbf16>
    %cst_29 = arith.constant dense<0.000000e+00> : vector<16x4xf32>
    %37 = tpu.matmul %35, %36, %cst_29 {dimension_numbers = #tpu.dot_dimension_numbers<[1], [0], [0], [1], [0, 0, 1, 1], [], []>} : vector<16x32xbf16>, vector<32x4xbf16>, vector<16x4xf32> -> vector<16x4xf32>
    %c0_30 = arith.constant 0 : index
    %c0_31 = arith.constant 0 : index
    %38 = vector.load %arg12[%c0_30, %c0_31] : memref<1x4xf32, #tpu.memory_space<vmem>>, vector<1x4xf32>
    %39 = vector.broadcast %38 : vector<1x4xf32> to vector<16x4xf32>
    %40 = arith.addf %37, %39 : vector<16x4xf32>
    %41 = arith.truncf %40 : vector<16x4xf32> to vector<16x4xbf16>
    %c0_32 = arith.constant 0 : index
    %c0_33 = arith.constant 0 : index
    %42 = vector.load %arg13[%c0_32, %c0_33] : memref<16x4xbf16, #tpu.memory_space<vmem>>, vector<16x4xbf16>
    tpu.vector_store %arg13[%c0_32, %c0_33], %41 {strides = array<i32>} : memref<16x4xbf16, #tpu.memory_space<vmem>>, vector<16x4xbf16>,
    return
  }
  func.func @transform_0(%arg0: i32) -> (i32, i32) {
    %c0_i32 = arith.constant 0 : i32
    %c0_i32_0 = arith.constant 0 : i32
    return %arg0, %c0_i32 : i32, i32
  }
  func.func @transform_1(%arg0: i32) -> (i32, i32) {
    %c0_i32 = arith.constant 0 : i32
    %c0_i32_0 = arith.constant 0 : i32
    %c0_i32_1 = arith.constant 0 : i32
    return %c0_i32, %c0_i32_0 : i32, i32
  }
  func.func @transform_2(%arg0: i32) -> (i32, i32) {
    %c0_i32 = arith.constant 0 : i32
    %c0_i32_0 = arith.constant 0 : i32
    %c0_i32_1 = arith.constant 0 : i32
    return %c0_i32, %c0_i32_0 : i32, i32
  }
  func.func @transform_3(%arg0: i32) -> (i32, i32) {
    %c0_i32 = arith.constant 0 : i32
    %c0_i32_0 = arith.constant 0 : i32
    %c0_i32_1 = arith.constant 0 : i32
    return %c0_i32, %c0_i32_0 : i32, i32
  }
  func.func @transform_4(%arg0: i32) -> (i32, i32) {
    %c0_i32 = arith.constant 0 : i32
    %c0_i32_0 = arith.constant 0 : i32
    %c0_i32_1 = arith.constant 0 : i32
    return %c0_i32, %c0_i32_0 : i32, i32
  }
  func.func @transform_5(%arg0: i32) -> (i32, i32) {
    %c0_i32 = arith.constant 0 : i32
    %c0_i32_0 = arith.constant 0 : i32
    %c0_i32_1 = arith.constant 0 : i32
    return %c0_i32, %c0_i32_0 : i32, i32
  }
  func.func @transform_6(%arg0: i32) -> (i32, i32) {
    %c0_i32 = arith.constant 0 : i32
    %c0_i32_0 = arith.constant 0 : i32
    %c0_i32_1 = arith.constant 0 : i32
    return %c0_i32, %c0_i32_0 : i32, i32
  }
  func.func @transform_7(%arg0: i32) -> (i32, i32) {
    %c0_i32 = arith.constant 0 : i32
    %c0_i32_0 = arith.constant 0 : i32
    %c0_i32_1 = arith.constant 0 : i32
    return %c0_i32, %c0_i32_0 : i32, i32
  }
  func.func @transform_8(%arg0: i32) -> (i32, i32) {
    %c0_i32 = arith.constant 0 : i32
    %c0_i32_0 = arith.constant 0 : i32
    %c0_i32_1 = arith.constant 0 : i32
    return %c0_i32, %c0_i32_0 : i32, i32
  }
  func.func @transform_9(%arg0: i32) -> (i32, i32) {
    %c0_i32 = arith.constant 0 : i32
    %c0_i32_0 = arith.constant 0 : i32
    %c0_i32_1 = arith.constant 0 : i32
    return %c0_i32, %c0_i32_0 : i32, i32
  }
  func.func @transform_10(%arg0: i32) -> (i32, i32) {
    %c0_i32 = arith.constant 0 : i32
    %c0_i32_0 = arith.constant 0 : i32
    %c0_i32_1 = arith.constant 0 : i32
    return %c0_i32, %c0_i32_0 : i32, i32
  }
  func.func @transform_11(%arg0: i32) -> (i32, i32) {
    %c0_i32 = arith.constant 0 : i32
    %c0_i32_0 = arith.constant 0 : i32
    %c0_i32_1 = arith.constant 0 : i32
    return %c0_i32, %c0_i32_0 : i32, i32
  }
  func.func @transform_12(%arg0: i32) -> (i32, i32) {
    %c0_i32 = arith.constant 0 : i32
    %c0_i32_0 = arith.constant 0 : i32
    return %arg0, %c0_i32 : i32, i32
  }
}

</mosaic_0001>

<bundles_post_ra>
// kernel: tpu_custom_call.1
= control target key start
LH: loop header
LB: loop body
LE: loop exit
PB: predicated region body
PF: predicated region fallthrough
CT: control target
= control target key end

     0   :  { %17 = vsyncpa [#allocation3], 0  ;;  %s1041_s0 = inlined_call_operand.hbm [shape: bf16[16,19], index: 0, kind: input, shape index: {}]   ;;  %s1042_s1 = inlined_call_operand.hbm [shape: bf16[19,32], index: 1, kind: input, shape index: {}]   ;;  %s1043_s2 = inlined_call_operand.hbm [shape: f32[1,32], index: 2, kind: input, shape index: {}]   ;;  %s1044_s3 = inlined_call_operand.vmem [shape: bf16[32,32], index: 3, kind: input, shape index: {}]   ;;  %s1045_s4 = inlined_call_operand.hbm [shape: f32[1,32], index: 4, kind: input, shape index: {}]   ;;  %s1046_s5 = inlined_call_operand.hbm [shape: bf16[19,32], index: 5, kind: input, shape index: {}]   ;;  %s1047_s6 = inlined_call_operand.vmem [shape: bf16[32,32], index: 6, kind: input, shape index: {}]   ;;  %s1048_s7 = inlined_call_operand.hbm [shape: f32[1,32], index: 7, kind: input, shape index: {}]   ;;  %s1049_s8 = inlined_call_operand.vmem [shape: bf16[32,32], index: 8, kind: input, shape index: {}]   ;;  %s1050_s9 = inlined_call_operand.vmem [shape: f32[1,32], index: 9, kind: input, shape index: {}]   ;;  %s1051_s10 = inlined_call_operand.vmem [shape: bf16[32,4], index: 10, kind: input, shape index: {}]   ;;  %s1052_s11 = inlined_call_operand.vmem [shape: f32[1,4], index: 11, kind: input, shape index: {}]   ;;  %s1053_s12 = inlined_call_operand.vmem [shape: bf16[16,4], index: 12, kind: output, shape index: {}]  }
   0x1   :  { %18 = vsyncpa [#allocation5], 0 }
   0x2   :  { %19 = vsyncpa [#allocation8], 0 }
   0x3   :  { %20 = vsyncpa [#allocation11], 0  ;;  %s809_s21 = smov [#allocation4]   ;;  %s810_s23 = smov [#allocation7]  }
   0x4   :  { %s38_s22 = sshll.u32 %s809_s21, 4  ;;  %s63_s24 = sshll.u32 %s810_s23, 4  ;;  %s39_s22 = int_to_ptr.vmem [resolvable:$true] %s38_s22  ;;  %s886_s24 = int_to_ptr.vmem [resolvable:$true] %s63_s24 }
   0x5   :  { %s669_s27 = scalar_lea.hbm %s1042_s1, 192 }
   0x6   :  { %p670_p0 = scmp.ne.s32.totalorder %s1042_s1, %s669_s27  ;;  %p673_p1 = scmp.lt.u32.totalorder %s669_s27, %s1042_s1 }
   0x8   :  { %p675_p2 = pnand %p673_p1, %p670_p0 }
   0xa   :  { %678 = shalt.err (!%p675_p2)
}
   0xb   :  { %s679_s14 = scalar_lea.vmem %s39_s22, 192  ;;  %p684_p4 = scmp.lt.s32.totalorder %s39_s22, %s39_s22 }
   0xc   :  { %p680_p3 = scmp.ne.s32.totalorder %s39_s22, %s679_s14  ;;  %p685_p5 = scmp.lt.s32.totalorder %s679_s14, %s679_s14 }
   0xe   :  { %p686_p6 = por %p685_p5, %p684_p4 }
  0x10   :  { %p687_p7 = pnand %p686_p6, %p680_p3 }
  0x12   :  { %690 = shalt.err (!%p687_p7)
}
  0x13   :  { %s811_s15 = smov 64   ;;  %s812_s16 = smov 4  }
  0x14   :  { %44 = dma.hbm_to_vmem [thread:$0]  %s1042_s1, 192, %s39_s22, [#allocation5], %s811_s15, %s811_s15, %s812_s16  }
  0x15   :  { %s691_s21 = scalar_lea.hbm %s1045_s4, 16 }
  0x16   :  { %p692_p8 = scmp.ne.s32.totalorder %s1045_s4, %s691_s21  ;;  %p695_p9 = scmp.lt.u32.totalorder %s691_s21, %s1045_s4 }
  0x18   :  { %p697_p10 = pnand %p695_p9, %p692_p8 }
  0x1a   :  { %700 = shalt.err (!%p697_p10)
}
  0x1b   :  { %s701_s28 = scalar_lea.vmem %s886_s24, 16  ;;  %s705_s1 = scalar_lea.vmem %s886_s24, 32 }
  0x1c   :  { %p702_p11 = scmp.ne.s32.totalorder %s886_s24, %s701_s28  ;;  %p706_p12 = scmp.lt.s32.totalorder %s886_s24, %s886_s24 }
  0x1d   :  { %p707_p13 = scmp.lt.s32.totalorder %s705_s1, %s701_s28 }
  0x1f   :  { %p708_p0 = por %p707_p13, %p706_p12 }
  0x21   :  { %p709_p1 = pnand %p708_p0, %p702_p11 }
  0x23   :  { %712 = shalt.err (!%p709_p1)
}
  0x24   :  { %66 = dma.hbm_to_vmem [thread:$0]  %s1045_s4, 16, %s886_s24, [#allocation8]  }
  0x25   :  { %s813_s30 = smov [#allocation2]   ;;  %s814_s14 = smov [#allocation6]  }
  0x26   :  { %s26_s13 = sshll.u32 %s813_s30, 4  ;;  %s51_s17 = sshll.u32 %s814_s14, 4  ;;  %s27_s13 = int_to_ptr.vmem [resolvable:$true] %s26_s13  ;;  %s52_s17 = int_to_ptr.vmem [resolvable:$true] %s51_s17 }
  0x27   :  { %s713_s20 = scalar_lea.hbm %s1041_s0, 128 }
  0x28   :  { %p714_p2 = scmp.ne.s32.totalorder %s1041_s0, %s713_s20  ;;  %p717_p3 = scmp.lt.u32.totalorder %s713_s20, %s1041_s0 }
  0x2a   :  { %p719_p4 = pnand %p717_p3, %p714_p2 }
  0x2c   :  { %722 = shalt.err (!%p719_p4)
}
  0x2d   :  { %s723_s4 = scalar_lea.vmem %s27_s13, 128  ;;  %p728_p6 = scmp.lt.s32.totalorder %s27_s13, %s27_s13 }
  0x2e   :  { %p724_p5 = scmp.ne.s32.totalorder %s27_s13, %s723_s4  ;;  %p729_p7 = scmp.lt.s32.totalorder %s723_s4, %s723_s4 }
  0x30   :  { %p730_p8 = por %p729_p7, %p728_p6 }
  0x32   :  { %p731_p9 = pnand %p730_p8, %p724_p5 }
  0x34   :  { %734 = shalt.err (!%p731_p9)
}
  0x35   :  { %32 = dma.hbm_to_vmem [thread:$0]  %s1041_s0, 128, %s27_s13, [#allocation3], %s811_s15, %s811_s15, %s812_s16  }
  0x36   :  { %s735_s22 = scalar_lea.hbm %s1043_s2, 16 }
  0x37   :  { %p736_p10 = scmp.ne.s32.totalorder %s1043_s2, %s735_s22  ;;  %p739_p11 = scmp.lt.u32.totalorder %s735_s22, %s1043_s2 }
  0x39   :  { %p741_p12 = pnand %p739_p11, %p736_p10 }
  0x3b   :  { %744 = shalt.err (!%p741_p12)
}
  0x3c   :  { %s745_s19 = scalar_lea.vmem %s52_s17, 16  ;;  %s749_s20 = scalar_lea.vmem %s52_s17, 32 }
  0x3d   :  { %p746_p13 = scmp.ne.s32.totalorder %s52_s17, %s745_s19  ;;  %p750_p0 = scmp.lt.s32.totalorder %s52_s17, %s52_s17 }
  0x3e   :  { %p751_p1 = scmp.lt.s32.totalorder %s749_s20, %s745_s19 }
  0x40   :  { %p752_p2 = por %p751_p1, %p750_p0 }
  0x42   :  { %p753_p3 = pnand %p752_p2, %p746_p13 }
  0x44   :  { %756 = shalt.err (!%p753_p3)
}
  0x45   :  { %54 = dma.hbm_to_vmem [thread:$0]  %s1043_s2, 16, %s52_s17, [#allocation5]  }
  0x46   :  { %s815_s21 = smov [#allocation9]   ;;  %s816_s25 = smov [#allocation10]  }
  0x47   :  { %s72_s23 = sshll.u32 %s815_s21, 4  ;;  %s87_s26 = sshll.u32 %s816_s25, 4  ;;  %s73_s23 = int_to_ptr.vmem [resolvable:$true] %s72_s23  ;;  %s88_s26 = int_to_ptr.vmem [resolvable:$true] %s87_s26 }
  0x48   :  { %s757_s27 = scalar_lea.hbm %s1046_s5, 192 }
  0x49   :  { %p758_p4 = scmp.ne.s32.totalorder %s1046_s5, %s757_s27  ;;  %p761_p5 = scmp.lt.u32.totalorder %s757_s27, %s1046_s5 }
  0x4b   :  { %p763_p6 = pnand %p761_p5, %p758_p4 }
  0x4d   :  { %766 = shalt.err (!%p763_p6)
}
  0x4e   :  { %s767_s2 = scalar_lea.vmem %s73_s23, 192  ;;  %p772_p8 = scmp.lt.s32.totalorder %s73_s23, %s73_s23 }
  0x4f   :  { %p768_p7 = scmp.ne.s32.totalorder %s73_s23, %s767_s2  ;;  %p773_p9 = scmp.lt.s32.totalorder %s767_s2, %s767_s2 }
  0x51   :  { %p774_p10 = por %p773_p9, %p772_p8 }
  0x53   :  { %p775_p11 = pnand %p774_p10, %p768_p7 }
  0x55   :  { %778 = shalt.err (!%p775_p11)
}
  0x56   :  { %78 = dma.hbm_to_vmem [thread:$0]  %s1046_s5, 192, %s73_s23, [#allocation8], %s811_s15, %s811_s15, %s812_s16  }
  0x57   :  { %s779_s19 = scalar_lea.hbm %s1048_s7, 16 }
  0x58   :  { %p780_p12 = scmp.ne.s32.totalorder %s1048_s7, %s779_s19  ;;  %p783_p13 = scmp.lt.u32.totalorder %s779_s19, %s1048_s7 }
  0x5a   :  { %p785_p0 = pnand %p783_p13, %p780_p12 }
  0x5c   :  { %788 = shalt.err (!%p785_p0)
}
  0x5d   :  { %s789_s25 = scalar_lea.vmem %s88_s26, 16  ;;  %s793_s4 = scalar_lea.vmem %s88_s26, 32 }
  0x5e   :  { %p790_p1 = scmp.ne.s32.totalorder %s88_s26, %s789_s25  ;;  %p794_p2 = scmp.lt.s32.totalorder %s88_s26, %s88_s26 }
  0x5f   :  { %p795_p3 = scmp.lt.s32.totalorder %s793_s4, %s789_s25 }
  0x61   :  { %p796_p4 = por %p795_p3, %p794_p2 }
  0x63   :  { %p797_p5 = pnand %p796_p4, %p790_p1 }
  0x65   :  { %800 = shalt.err (!%p797_p5)
}
  0x66   :  { %90 = dma.hbm_to_vmem [thread:$0]  %s1048_s7, 16, %s88_s26, [#allocation11]  }
  0x67   :  { %801 = dma.done.wait [#allocation3], 128  }
  0x68   :  { %802 = vsyncadd [#allocation3], 4294967168 }
  0x69   :  { %803 = dma.done.wait [#allocation5], 208  }
  0x6a   :  { %804 = vsyncadd [#allocation5], 4294967088 }
  0x6b   :  { %805 = dma.done.wait [#allocation8], 208  }
  0x6c   :  { %806 = vsyncadd [#allocation8], 4294967088 }
  0x6d   :  { %807 = dma.done.wait [#allocation11], 16  }
  0x6e   :  { %808 = vsyncadd [#allocation11], 4294967280  ;;  %v817_v0 = vmov 0.0   ;;  %vm148_vm0 = vcmask 1040384   ;;  %vm818_vm1 = vmmov 0   ;;  %vm149_vm2 = vcmask 1041408  }
  0x6f   :  { %596 = vmatprep.subr.bf16.mxu0 %v817_v0  ;;  %604 = vmatprep.subr.bf16.mxu1 %v817_v0  ;;  %v819_v1 = vmov 65535   ;;  %v656_v3 = vld [vmem:[#allocation4] sm:$0xff]   ;;  %v657_v5 = vld [vmem:[#allocation4 + $0x8] ss:$0 sps:$4 sm:$0x33]   ;;  %v659_v7 = vld [vmem:[#allocation2] sm:$0xff]  }
  0x70   :  { %600 = vmatprep.mubr.msk.bf16.mxu0 %vm818_vm1, %v817_v0  ;;  %608 = vmatprep.mubr.msk.bf16.mxu1 %vm818_vm1, %v817_v0  ;;  %v150_v2 = vsel %vm148_vm0, 4294967295, %v819_v1  ;;  %vm144_vm3 = vcmask 154624   ;;  %v660_v8 = vld [vmem:[%s1044_s3] sm:$0xff]   ;;  %v661_v9 = vld [vmem:[%s1044_s3 + $0x8] sm:$0xff]   ;;  %v550_v10 = vld [vmem:[#allocation6] ss:$0 sm:$0xff] }
  0x71   :  { %v151_v4 = vsel %vm149_vm2, %v150_v2, 0  ;;  %597 = vmatpush3.bf16.msra.mxu0 %v656_v3  ;;  %605 = vmatpush3.bf16.msra.mxu1 %v660_v8  ;;  %v658_v18 = vld [vmem:[#allocation9 + $0x8] ss:$0 sps:$4 sm:$0x33]   ;;  %vm221_vm4 = vcmask 261120   ;;  %v662_v19 = vld [vmem:[#allocation9] sm:$0xff]  }
  0x72   :  { %598 = vmatprep.subr.bf16.mxu0 %v817_v0  ;;  %v153_v6 = vand.u32 %v657_v5, %v151_v4  ;;  %606 = vmatprep.subr.bf16.mxu1 %v817_v0  ;;  %v820_v20 = vmov 0   ;;  %v341_v22 = vand.u32 %v658_v18, %v151_v4  ;;  %v663_v23 = vld [vmem:[%s1047_s6] sm:$0xff]   ;;  %v664_v24 = vld [vmem:[%s1047_s6 + $0x8] sm:$0xff]   ;;  %v555_v25 = vld [vmem:[#allocation7] ss:$0 sm:$0xff]  ;;  %vm539_vm5 = vcmask 27648  }
  0x73   :  { %v665_v38 = vld [vmem:[%s1049_s8] sm:$0xff]   ;;  %v666_v39 = vld [vmem:[%s1049_s8 + $0x8] sm:$0xff]  }
  0x74   :  { %v565_v43 = vld [vmem:[#allocation10] ss:$0 sm:$0xff]  ;;  %v668_v52 = vld [vmem:[%s1051_s10 + $0x8] sm:$0xff]   ;;  %v566_v53 = vld [vmem:[%s1050_s9] ss:$0 sm:$0xff] }
  0x75   :  { %599 = vmatpush3.bf16.msra.mxu0 %v153_v6  ;;  %607 = vmatpush3.bf16.msra.mxu1 %v661_v9  ;;  %v667_v51 = vld [vmem:[%s1051_s10] sm:$0xff]  }
  0x76   :  { %612 = vmatprep.subr.bf16.mxu0 %v817_v0  ;;  %620 = vmatprep.subr.bf16.mxu1 %v817_v0  ;;  %v570_v62 = vld [vmem:[%s1052_s11] ss:$0 sm:$0xff] }
  0x78   :  { %601 = vmatmul.mubr.msk.bf16.vlgmr.msra.gmra.mrb[0].mxu0 %vm144_vm3, %v659_v7 }
  0x79   :  { %616 = vmatprep.mubr.msk.bf16.mxu0 %vm818_vm1, %v817_v0  ;;  %613 = vmatpush3.bf16.msra.mxu0 %v663_v23 }
  0x7a   :  { %614 = vmatprep.subr.bf16.mxu0 %v817_v0 }
  0x7d   :  { %615 = vmatpush3.bf16.msra.mxu0 %v664_v24 }
  0x7e   :  { %628 = vmatprep.subr.bf16.mxu0 %v817_v0 }
 0x14b   :  { %v189_v11 = vpop.f32.mrb[0].mxu0 }
 0x14c   :  { %v602_v12 = vpop.f32.mrb[1].mxu0  ;;  %v190_v14 = vadd.f32 %v550_v10, %v189_v11 }
 0x14d   :  { %v192_v13 = vpop.f32.mrb[2].mxu0 }
 0x14e   :  { %v193_v15 = vadd.f32 %v550_v10, %v192_v13  ;;  %v603_v16 = vpop.f32.mrb[3].mxu0 }
 0x150   :  { %v196_v17 = vpack.c.bf16 %v193_v15, %v190_v14 }
 0x152   :  { %v197_v21 = vmax.bf16 %v820_v20, %v196_v17 }
 0x154   :  { %609 = vmatmul.mubr.msk.bf16.vlgmr.msra.gmra.mrb[0].mxu1 %vm221_vm4, %v197_v21 }
 0x155   :  { %621 = vmatpush3.bf16.msra.mxu1 %v662_v19  ;;  %624 = vmatprep.mubr.msk.bf16.mxu1 %vm818_vm1, %v817_v0 }
 0x156   :  { %622 = vmatprep.subr.bf16.mxu1 %v817_v0 }
 0x159   :  { %623 = vmatpush3.bf16.msra.mxu1 %v341_v22 }
 0x15a   :  { %636 = vmatprep.subr.bf16.mxu1 %v817_v0 }
 0x15c   :  { %625 = vmatmul.mubr.msk.bf16.vlgmr.msra.gmra.mrb[4].mxu1 %vm144_vm3, %v659_v7 }
 0x15d   :  { %640 = vmatprep.mubr.msk.bf16.mxu1 %vm818_vm1, %v817_v0  ;;  %637 = vmatpush3.bf16.msra.mxu1 %v667_v51 }
 0x15e   :  { %638 = vmatprep.subr.bf16.mxu1 %v817_v0 }
 0x161   :  { %639 = vmatpush3.bf16.msra.mxu1 %v668_v52 }
 0x227   :  { %v259_v26 = vpop.f32.mrb[0].mxu1 }
 0x228   :  { %v610_v27 = vpop.f32.mrb[1].mxu1  ;;  %v260_v29 = vadd.f32 %v555_v25, %v259_v26 }
 0x229   :  { %v262_v28 = vpop.f32.mrb[2].mxu1 }
 0x22a   :  { %v263_v30 = vadd.f32 %v555_v25, %v262_v28  ;;  %v611_v31 = vpop.f32.mrb[3].mxu1 }
 0x22c   :  { %v266_v32 = vpack.c.bf16 %v263_v30, %v260_v29 }
 0x22e   :  { %v267_v33 = vmax.bf16 %v820_v20, %v266_v32 }
 0x22f   :  { %v377_v34 = vpop.f32.mrb[4].mxu1 }
 0x230   :  { %617 = vmatmul.mubr.msk.bf16.vlgmr.msra.gmra.mrb[4].mxu0 %vm221_vm4, %v267_v33  ;;  %v626_v35 = vpop.f32.mrb[5].mxu1 }
 0x231   :  { %v380_v36 = vpop.f32.mrb[6].mxu1  ;;  %632 = vmatprep.mubr.msk.bf16.mxu0 %vm818_vm1, %v817_v0  ;;  %629 = vmatpush3.bf16.msra.mxu0 %v665_v38 }
 0x232   :  { %v627_v37 = vpop.f32.mrb[7].mxu1  ;;  %630 = vmatprep.subr.bf16.mxu0 %v817_v0 }
 0x235   :  { %631 = vmatpush3.bf16.msra.mxu0 %v666_v39 }
 0x303   :  { %v324_v40 = vpop.f32.mrb[4].mxu0 }
 0x304   :  { %v378_v41 = vadd.f32 %v377_v34, %v324_v40  ;;  %v618_v42 = vpop.f32.mrb[5].mxu0 }
 0x305   :  { %v327_v44 = vpop.f32.mrb[6].mxu0 }
 0x306   :  { %v381_v45 = vadd.f32 %v380_v36, %v327_v44  ;;  %v619_v46 = vpop.f32.mrb[7].mxu0  ;;  %v391_v47 = vadd.f32 %v565_v43, %v378_v41 }
 0x308   :  { %v392_v48 = vadd.f32 %v565_v43, %v381_v45 }
 0x30a   :  { %v393_v49 = vpack.c.bf16 %v392_v48, %v391_v47 }
 0x30c   :  { %v394_v50 = vmax.bf16 %v820_v20, %v393_v49 }
 0x30e   :  { %633 = vmatmul.mubr.msk.bf16.vlgmr.msra.gmra.mrb[8].mxu0 %vm221_vm4, %v394_v50 }
 0x3e1   :  { %v455_v54 = vpop.f32.mrb[8].mxu0 }
 0x3e2   :  { %v634_v55 = vpop.f32.mrb[9].mxu0  ;;  %v456_v57 = vadd.f32 %v566_v53, %v455_v54 }
 0x3e3   :  { %v458_v56 = vpop.f32.mrb[10].mxu0 }
 0x3e4   :  { %v459_v58 = vadd.f32 %v566_v53, %v458_v56  ;;  %v635_v59 = vpop.f32.mrb[11].mxu0 }
 0x3e6   :  { %v462_v60 = vpack.c.bf16 %v459_v58, %v456_v57 }
 0x3e8   :  { %v463_v61 = vmax.bf16 %v820_v20, %v462_v60 }
 0x3ea   :  { %641 = vmatmul.mubr.msk.bf16.vlgmr.msra.gmra.mrb[8].mxu1 %vm221_vm4, %v463_v61 }
 0x4bd   :  { %v524_v63 = vpop.f32.mrb[8].mxu1 }
 0x4be   :  { %v525_v0 = vadd.f32 %v570_v62, %v524_v63  ;;  %v642_v1 = vpop.f32.mrb[9].mxu1 }
 0x4bf   :  { %v527_v2 = vpop.f32.mrb[10].mxu1 }
 0x4c0   :  { %v576_v3 = vpack.c.bf16 %v525_v0, %v525_v0  ;;  %v528_v4 = vadd.f32 %v570_v62, %v527_v2  ;;  %v643_v5 = vpop.f32.mrb[11].mxu1 }
 0x4c2   :  { %540 = vst.msk [vmem:[%s1053_s12] sm:$0xf] %vm539_vm5, %v576_v3  ;;  %v577_v6 = vpack.c.bf16 %v528_v4, %v528_v4 }
 0x4c4   :  { %541 = vst.msk [vmem:[%s1053_s12 + $0x4] sm:$0xf] %vm539_vm5, %v577_v6 }
 0x4c5   :  { %546 = vsyncpa [#allocation3], 1 }
 0x4c6   :  { %547 = vsyncpa [#allocation5], 1 }
 0x4c7   :  { %548 = vsyncpa [#allocation8], 1 }
 0x4c8   :  { %549 = vsyncpa [#allocation11], 1 }

</bundles_post_ra>
